<compile_context>
chip_gen: v5e
topology: v5e:2x2
jax: 0.10.0
libtpu: 0.0.40
codegen_flags: <defaults>
</compile_context>

<pallas_src>
import jax
import jax.numpy as jnp
from jax.experimental import pallas as pl
from jax.experimental.pallas import tpu as pltpu


# ------------------------- tiling / VMEM heuristics -------------------------- #

_TILE_BUDGET_BYTES = 2 * 1024 * 1024      # per pipelined logits/feature buffer
_MAX_TILE_ROWS = 2048
_FUSE_LIMIT_BYTES = 6 * 1024 * 1024       # single-launch fusion when all inputs fit this
_VMEM_LIMIT_BYTES = 32 * 1024 * 1024      # safe on v5e/v6e (128 MiB phys) and v7x (64 MiB)

_PARAMS = pltpu.CompilerParams(
    dimension_semantics=("arbitrary",),
    vmem_limit_bytes=_VMEM_LIMIT_BYTES,
)

_SCALAR_OUT = pl.BlockSpec((1, 1), lambda i: (0, 0),
                           memory_space=pltpu.MemorySpace.SMEM)


def _sublane_multiple(dtype):
    # rows per packed sublane group: f32 -> 8, bf16 -> 16, int8/fp8 -> 32
    return 8 * max(1, 4 // jnp.dtype(dtype).itemsize)


def _row_tile(n_rows, row_bytes, dtype, tile_override=None):
    """Pick a row tile (multiple of the dtype's sublane packing); returns (tile, n_tiles)."""
    mult = _sublane_multiple(dtype)
    if tile_override is not None:
        t = max(mult, (int(tile_override) // mult) * mult)
    else:
        t = _TILE_BUDGET_BYTES // max(int(row_bytes), 1)
        t = min(t, _MAX_TILE_ROWS)
        t = max(mult, (t // mult) * mult)
    if n_rows <= t:
        return n_rows, 1            # single full-array block (exempt from the (8,128) rule)
    return t, -(-n_rows // t)


# ------------------------------ kernel bodies -------------------------------- #

def _ce_block_sum(logits_ref, labels_ref, row_offset, n_rows, mask_rows):
    """f32 sum over this block of per-row (logsumexp - target_logit)."""
    logits = logits_ref[...].astype(jnp.float32)           # [T, C]
    labels = labels_ref[...]                                 # [T, 1] int32
    m = jnp.max(logits, axis=-1, keepdims=True)              # stable logsumexp
    lse = m + jnp.log(jnp.sum(jnp.exp(logits - m), axis=-1, keepdims=True))
    col = jax.lax.broadcasted_iota(jnp.int32, logits.shape, 1)
    tgt = jnp.sum(jnp.where(col == labels, logits, 0.0), axis=-1, keepdims=True)
    per_row = lse - tgt                                       # [T, 1]
    if mask_rows:
        # Padded rows of a partial last tile hold garbage, but it stays row-local and
        # jnp.where is a NaN-safe select, so masking the [T,1] result suffices
        # (no [T,C] pre-mask pass).
        row = row_offset + jax.lax.broadcasted_iota(jnp.int32, per_row.shape, 0)
        per_row = jnp.where(row < n_rows, per_row, 0.0)
    return jnp.sum(per_row)


def _make_ce_sum_kernel(n_rows, tile_rows, scale, mask_rows):
    """scale * sum of per-row CE, row-tiled, running sum in SMEM scratch."""
    def kernel(logits_ref, labels_ref, out_ref, acc_ref):
        i = pl.program_id(0)

        @pl.when(i == 0)
        def _init():
            acc_ref[0, 0] = jnp.float32(0.0)

        acc_ref[0, 0] += _ce_block_sum(logits_ref, labels_ref,
                                       i * tile_rows, n_rows, mask_rows)

        @pl.when(i == pl.num_programs(0) - 1)
        def _fin():
            out_ref[0, 0] = acc_ref[0, 0] * jnp.float32(scale)

    return kernel


def _make_center_sum_kernel(n_rows, tile_rows, scale, mask_rows):
    """scale * sum((a - b)^2), row-tiled."""
    def kernel(a_ref, b_ref, out_ref, acc_ref):
        i = pl.program_id(0)

        @pl.when(i == 0)
        def _init():
            acc_ref[0, 0] = jnp.float32(0.0)

        d = a_ref[...].astype(jnp.float32) - b_ref[...].astype(jnp.float32)
        sq = jnp.sum(d * d, axis=-1, keepdims=True)           # [T, 1]
        if mask_rows:
            row = i * tile_rows + jax.lax.broadcasted_iota(jnp.int32, sq.shape, 0)
            sq = jnp.where(row < n_rows, sq, 0.0)
        acc_ref[0, 0] += jnp.sum(sq)

        @pl.when(i == pl.num_programs(0) - 1)
        def _fin():
            out_ref[0, 0] = acc_ref[0, 0] * jnp.float32(scale)

    return kernel


def _make_fused_cal_kernel(inv_3b, inv_b):
    """Whole CAL training loss in one invocation; all inputs are full-array blocks."""
    def kernel(raw_ref, y_raw_ref, aug_ref, y_aug_ref, aux_ref, y_aux_ref,
               fm_ref, fc_ref, out_ref):
        ce_sum = (_ce_block_sum(raw_ref, y_raw_ref, 0, raw_ref.shape[0], False)
                  + _ce_block_sum(aug_ref, y_aug_ref, 0, aug_ref.shape[0], False)
                  + _ce_block_sum(aux_ref, y_aux_ref, 0, aux_ref.shape[0], False))
        d = fm_ref[...].astype(jnp.float32) - fc_ref[...].astype(jnp.float32)
        out_ref[0, 0] = (ce_sum * jnp.float32(inv_3b)
                         + jnp.sum(d * d) * jnp.float32(inv_b))
    return kernel


# --------------------------------- wrappers ---------------------------------- #

def _ce_sum_scaled(logits, labels, scale, *, tile_override=None):
    """scale * sum_i (logsumexp(logits_i) - logits_i[label_i]) via a tiled pallas_call."""
    n, c = logits.shape
    labels2d = labels.astype(jnp.int32).reshape(n, 1)
    row_bytes = c * jnp.dtype(logits.dtype).itemsize
    tile, n_tiles = _row_tile(n, row_bytes, logits.dtype, tile_override)
    mask_rows = (n % tile) != 0
    out = pl.pallas_call(
        _make_ce_sum_kernel(n, tile, scale, mask_rows),
        out_shape=jax.ShapeDtypeStruct((1, 1), jnp.float32),
        grid=(n_tiles,),
        in_specs=[pl.BlockSpec((tile, c), lambda i: (i, 0)),
                  pl.BlockSpec((tile, 1), lambda i: (i, 0))],
        out_specs=_SCALAR_OUT,
        scratch_shapes=[pltpu.SMEM((1, 1), jnp.float32)],
        compiler_params=_PARAMS,
    )(logits, labels2d)
    return out[0, 0]


def cross_entropy_mean(logits, labels, *, tile_override=None):
    """nn.CrossEntropyLoss(reduction='mean')."""
    return _ce_sum_scaled(logits, labels, 1.0 / float(logits.shape[0]),
                          tile_override=tile_override)


def center_loss(features, centers, *, tile_override=None):
    """nn.MSELoss(reduction='sum')(features, centers) / features.shape[0]."""
    b = features.shape[0]
    f2 = features.reshape(b, -1)
    c2 = centers.reshape(b, -1)
    f = f2.shape[1]
    row_bytes = f * jnp.dtype(f2.dtype).itemsize
    tile, n_tiles = _row_tile(b, row_bytes, f2.dtype, tile_override)
    mask_rows = (b % tile) != 0
    out = pl.pallas_call(
        _make_center_sum_kernel(b, tile, 1.0 / float(b), mask_rows),
        out_shape=jax.ShapeDtypeStruct((1, 1), jnp.float32),
        grid=(n_tiles,),
        in_specs=[pl.BlockSpec((tile, f), lambda i: (i, 0)),
                  pl.BlockSpec((tile, f), lambda i: (i, 0))],
        out_specs=_SCALAR_OUT,
        scratch_shapes=[pltpu.SMEM((1, 1), jnp.float32)],
        compiler_params=_PARAMS,
    )(f2, c2)
    return out[0, 0]


def cal_training_loss(y_pred_raw, y_pred_aux, feature_matrix, feature_center_batch,
                      y_pred_aug, y, *, fuse_limit_bytes=_FUSE_LIMIT_BYTES):
    """Full 7-tuple CAL training loss.  No concatenation of the logits tensors."""
    b = int(y.shape[0])
    inv_3b = 1.0 / (3.0 * b)
    inv_b = 1.0 / float(b)

    y2 = y.astype(jnp.int32).reshape(b, 1)
    # Label concatenation is O(B) int32 -> negligible (the logits are NOT concatenated).
    y_aug2 = jnp.concatenate([y2, y2], axis=0)
    y_aux2 = jnp.concatenate([y2, y2, y2], axis=0)

    fm = feature_matrix.reshape(b, -1)
    fc = feature_center_batch.reshape(b, -1)

    def nbytes(x):
        return x.size * jnp.dtype(x.dtype).itemsize

    total = (nbytes(y_pred_raw) + nbytes(y_pred_aug) + nbytes(y_pred_aux)
             + nbytes(fm) + nbytes(fc))

    if total <= fuse_limit_bytes:
        # Typical CAL sizes: everything fits VMEM -> ONE launch, grid of 1, every
        # input a full-array block streamed exactly once.
        out = pl.pallas_call(
            _make_fused_cal_kernel(inv_3b, inv_b),
            out_shape=jax.ShapeDtypeStruct((1, 1), jnp.float32),
            grid=(1,),
            in_specs=[pl.BlockSpec(y_pred_raw.shape, lambda i: (0, 0)),
                      pl.BlockSpec((b, 1), lambda i: (0, 0)),
                      pl.BlockSpec(y_pred_aug.shape, lambda i: (0, 0)),
                      pl.BlockSpec((2 * b, 1), lambda i: (0, 0)),
                      pl.BlockSpec(y_pred_aux.shape, lambda i: (0, 0)),
                      pl.BlockSpec((3 * b, 1), lambda i: (0, 0)),
                      pl.BlockSpec(fm.shape, lambda i: (0, 0)),
                      pl.BlockSpec(fc.shape, lambda i: (0, 0))],
            out_specs=_SCALAR_OUT,
            compiler_params=_PARAMS,
        )(y_pred_raw, y2, y_pred_aug, y_aug2, y_pred_aux, y_aux2, fm, fc)
        return out[0, 0]

    # Large slabs: three row-tiled CE accumulations + tiled center loss; scalar partials
    # summed in the wrapper.  Still no [6B, C] concat HBM round-trip.
    return (_ce_sum_scaled(y_pred_raw, y2, inv_3b)
            + _ce_sum_scaled(y_pred_aug, y_aug2, inv_3b)
            + _ce_sum_scaled(y_pred_aux, y_aux2, inv_3b)
            + center_loss(fm, fc))


class CALLoss:
    """JAX/Pallas equivalent of the PyTorch CALLoss module (no parameters)."""

    def __call__(self, output, y):
        if isinstance(output, tuple) and len(output) == 7:
            (_, y_pred_raw, y_pred_aux, feature_matrix,
             feature_center_batch, y_pred_aug, _) = output
            return cal_training_loss(y_pred_raw, y_pred_aux, feature_matrix,
                                     feature_center_batch, y_pred_aug, y)
        elif isinstance(output, tuple) and len(output) == 2:
            y_pred, _ = output
            return cross_entropy_mean(y_pred, y)
        else:
            return cross_entropy_mean(output, y)


# ------------------------------ pure-JAX reference --------------------------- #

def _ce_ref(logits, labels):
    lse = jax.scipy.special.logsumexp(logits.astype(jnp.float32), axis=-1)
    tgt = jnp.take_along_axis(logits.astype(jnp.float32),
                              labels.astype(jnp.int32)[:, None], axis=-1)[:, 0]
    return jnp.mean(lse - tgt)


def _calloss_ref(output, y):
    (_, y_pred_raw, y_pred_aux, feature_matrix,
     feature_center_batch, y_pred_aug, _) = output
    y_aug = jnp.concatenate([y, y], axis=0)
    y_aux = jnp.concatenate([y, y_aug], axis=0)
    cl = jnp.sum((feature_matrix.astype(jnp.float32)
                  - feature_center_batch.astype(jnp.float32)) ** 2) / feature_matrix.shape[0]
    return (_ce_ref(y_pred_raw, y) / 3.0
            + _ce_ref(y_pred_aug, y_aug) * 2.0 / 3.0
            + _ce_ref(y_pred_aux, y_aux) * 3.0 / 3.0
            + cl)


# ----------------------------------- main ------------------------------------ #

if __name__ == "__main__":
    key = jax.random.PRNGKey(0)
    B, C = 2, 10          # batch, num classes
    M, D = 4, 32          # attention parts, feature dim -> feature matrix [B, M, D]

    k1, k2, k3, k4, k5, k6 = jax.random.split(key, 6)
    y = jax.random.randint(k1, (B,), 0, C, dtype=jnp.int32)
    y_pred_raw = jax.random.normal(k2, (B, C), dtype=jnp.float32)
    y_pred_aug = jax.random.normal(k3, (2 * B, C), dtype=jnp.float32)
    y_pred_aux = jax.random.normal(k4, (3 * B, C), dtype=jnp.float32)
    feature_matrix = jax.random.normal(k5, (B, M, D), dtype=jnp.float32)
    feature_center_batch = jax.random.normal(k6, (B, M, D), dtype=jnp.float32)

    output7 = (None, y_pred_raw, y_pred_aux, feature_matrix,
               feature_center_batch, y_pred_aug, None)

    loss_fn = CALLoss()

    # 7-tuple branch: single fused launch (no logits concatenation)
    loss7 = jax.block_until_ready(loss_fn(output7, y))
    ref7 = _calloss_ref(output7, y)
    assert jnp.allclose(loss7, ref7, rtol=1e-5, atol=1e-5), (loss7, ref7)

    # 7-tuple branch: forced split (multi-call) path
    loss7s = jax.block_until_ready(
        cal_training_loss(y_pred_raw, y_pred_aux, feature_matrix,
                          feature_center_batch, y_pred_aug, y, fuse_limit_bytes=0))
    assert jnp.allclose(loss7s, ref7, rtol=1e-5, atol=1e-5), (loss7s, ref7)

    # plain-logits branch (eval path)
    loss1 = jax.block_until_ready(loss_fn(y_pred_raw, y))
    assert jnp.allclose(loss1, _ce_ref(y_pred_raw, y), rtol=1e-5, atol=1e-5)

    # 2-tuple branch
    loss2 = jax.block_until_ready(loss_fn((y_pred_raw, None), y))
    assert jnp.allclose(loss2, _ce_ref(y_pred_raw, y), rtol=1e-5, atol=1e-5)

    # multi-tile path with a partial (masked) last tile
    kb1, kb2, kb3 = jax.random.split(k6, 3)
    Bb, Cb = 40, 130
    yb = jax.random.randint(kb1, (Bb,), 0, Cb, dtype=jnp.int32)
    big_logits = jax.random.normal(kb2, (Bb, Cb), dtype=jnp.float32)
    ce_big = jax.block_until_ready(cross_entropy_mean(big_logits, yb, tile_override=16))
    assert jnp.allclose(ce_big, _ce_ref(big_logits, yb), rtol=1e-5, atol=1e-5)

    big_feat = jax.random.normal(kb3, (Bb, 3, 64), dtype=jnp.float32)
    big_cent = jnp.zeros_like(big_feat)
    cl_big = jax.block_until_ready(center_loss(big_feat, big_cent, tile_override=16))
    cl_ref = jnp.sum(big_feat ** 2) / Bb
    assert jnp.allclose(cl_big, cl_ref, rtol=1e-5, atol=1e-5)

    # bf16 logits exercise the 16-row sublane tiling
    ce_bf16 = jax.block_until_ready(
        cross_entropy_mean(big_logits.astype(jnp.bfloat16), yb, tile_override=16))
    assert jnp.allclose(ce_bf16, _ce_ref(big_logits.astype(jnp.bfloat16), yb),
                        rtol=2e-2, atol=2e-2)

    print("KERNEL_OK")
</pallas_src>

<mosaic_0001>
module attributes {stable_mosaic.version = 11 : i64} {
  func.func @kernel(%arg0: i32, %arg1: memref<2x10xf32, #tpu.memory_space<vmem>>, %arg2: memref<2x1xi32, #tpu.memory_space<vmem>>, %arg3: memref<4x10xf32, #tpu.memory_space<vmem>>, %arg4: memref<4x1xi32, #tpu.memory_space<vmem>>, %arg5: memref<6x10xf32, #tpu.memory_space<vmem>>, %arg6: memref<6x1xi32, #tpu.memory_space<vmem>>, %arg7: memref<2x128xf32, #tpu.memory_space<vmem>>, %arg8: memref<2x128xf32, #tpu.memory_space<vmem>>, %arg9: memref<1x1xf32, #tpu.memory_space<smem>>) attributes {dimension_semantics = [#tpu.dimension_semantics<arbitrary>], iteration_bounds = array<i64: 1>, scalar_prefetch = 0 : i64, scratch_operands = 0 : i64, tpu.core_type = #tpu.core_type<tc>, window_params = [{pipeline_mode = #tpu.pipeline_mode<synchronous>, transform_indices = @transform_0, window_bounds = array<i64: 2, 10>}, {pipeline_mode = #tpu.pipeline_mode<synchronous>, transform_indices = @transform_1, window_bounds = array<i64: 2, 1>}, {pipeline_mode = #tpu.pipeline_mode<synchronous>, transform_indices = @transform_2, window_bounds = array<i64: 4, 10>}, {pipeline_mode = #tpu.pipeline_mode<synchronous>, transform_indices = @transform_3, window_bounds = array<i64: 4, 1>}, {pipeline_mode = #tpu.pipeline_mode<synchronous>, transform_indices = @transform_4, window_bounds = array<i64: 6, 10>}, {pipeline_mode = #tpu.pipeline_mode<synchronous>, transform_indices = @transform_5, window_bounds = array<i64: 6, 1>}, {pipeline_mode = #tpu.pipeline_mode<synchronous>, transform_indices = @transform_6, window_bounds = array<i64: 2, 128>}, {pipeline_mode = #tpu.pipeline_mode<synchronous>, transform_indices = @transform_7, window_bounds = array<i64: 2, 128>}, {transform_indices = @transform_8, window_bounds = array<i64: 1, 1>}]} {
    %c0 = arith.constant 0 : index
    %c0_0 = arith.constant 0 : index
    %0 = vector.load %arg1[%c0, %c0_0] : memref<2x10xf32, #tpu.memory_space<vmem>>, vector<2x10xf32>
    %c0_1 = arith.constant 0 : index
    %c0_2 = arith.constant 0 : index
    %1 = vector.load %arg2[%c0_1, %c0_2] : memref<2x1xi32, #tpu.memory_space<vmem>>, vector<2x1xi32>
    %cst = arith.constant dense<0xFF800000> : vector<2xf32>
    %2 = vector.multi_reduction <maximumf>, %0, %cst [1] : vector<2x10xf32> to vector<2xf32>
    %3 = vector.shape_cast %2 : vector<2xf32> to vector<2x1xf32>
    %4 = vector.broadcast %3 : vector<2x1xf32> to vector<2x10xf32>
    %5 = arith.subf %0, %4 : vector<2x10xf32>
    %6 = math.exp %5 : vector<2x10xf32>
    %cst_3 = arith.constant dense<0.000000e+00> : vector<2xf32>
    %7 = vector.multi_reduction <add>, %6, %cst_3 [1] : vector<2x10xf32> to vector<2xf32>
    %8 = vector.shape_cast %7 : vector<2xf32> to vector<2x1xf32>
    %9 = math.log %8 : vector<2x1xf32>
    %10 = arith.addf %3, %9 : vector<2x1xf32>
    %11 = tpu.iota {dimensions = array<i32: 1>} : vector<2x10xi32>
    %12 = vector.broadcast %1 : vector<2x1xi32> to vector<2x10xi32>
    %13 = arith.cmpi eq, %11, %12 : vector<2x10xi32>
    %cst_4 = arith.constant 0.000000e+00 : f32
    %14 = vector.broadcast %cst_4 : f32 to vector<2x10xf32>
    %15 = arith.select %13, %0, %14 : vector<2x10xi1>, vector<2x10xf32>
    %cst_5 = arith.constant dense<0.000000e+00> : vector<2xf32>
    %16 = vector.multi_reduction <add>, %15, %cst_5 [1] : vector<2x10xf32> to vector<2xf32>
    %17 = vector.shape_cast %16 : vector<2xf32> to vector<2x1xf32>
    %18 = arith.subf %10, %17 : vector<2x1xf32>
    %19 = vector.shape_cast %18 : vector<2x1xf32> to vector<1x2x1xf32>
    %cst_6 = arith.constant dense<0.000000e+00> : vector<1xf32>
    %20 = vector.multi_reduction <add>, %19, %cst_6 [1, 2] : vector<1x2x1xf32> to vector<1xf32>
    %21 = vector.shape_cast %20 : vector<1xf32> to vector<1x1x1xf32>
    %22 = vector.extract %21[0, 0, 0] : f32 from vector<1x1x1xf32>
    %c0_7 = arith.constant 0 : index
    %c0_8 = arith.constant 0 : index
    %23 = vector.load %arg3[%c0_7, %c0_8] : memref<4x10xf32, #tpu.memory_space<vmem>>, vector<4x10xf32>
    %c0_9 = arith.constant 0 : index
    %c0_10 = arith.constant 0 : index
    %24 = vector.load %arg4[%c0_9, %c0_10] : memref<4x1xi32, #tpu.memory_space<vmem>>, vector<4x1xi32>
    %cst_11 = arith.constant dense<0xFF800000> : vector<4xf32>
    %25 = vector.multi_reduction <maximumf>, %23, %cst_11 [1] : vector<4x10xf32> to vector<4xf32>
    %26 = vector.shape_cast %25 : vector<4xf32> to vector<4x1xf32>
    %27 = vector.broadcast %26 : vector<4x1xf32> to vector<4x10xf32>
    %28 = arith.subf %23, %27 : vector<4x10xf32>
    %29 = math.exp %28 : vector<4x10xf32>
    %cst_12 = arith.constant dense<0.000000e+00> : vector<4xf32>
    %30 = vector.multi_reduction <add>, %29, %cst_12 [1] : vector<4x10xf32> to vector<4xf32>
    %31 = vector.shape_cast %30 : vector<4xf32> to vector<4x1xf32>
    %32 = math.log %31 : vector<4x1xf32>
    %33 = arith.addf %26, %32 : vector<4x1xf32>
    %34 = tpu.iota {dimensions = array<i32: 1>} : vector<4x10xi32>
    %35 = vector.broadcast %24 : vector<4x1xi32> to vector<4x10xi32>
    %36 = arith.cmpi eq, %34, %35 : vector<4x10xi32>
    %cst_13 = arith.constant 0.000000e+00 : f32
    %37 = vector.broadcast %cst_13 : f32 to vector<4x10xf32>
    %38 = arith.select %36, %23, %37 : vector<4x10xi1>, vector<4x10xf32>
    %cst_14 = arith.constant dense<0.000000e+00> : vector<4xf32>
    %39 = vector.multi_reduction <add>, %38, %cst_14 [1] : vector<4x10xf32> to vector<4xf32>
    %40 = vector.shape_cast %39 : vector<4xf32> to vector<4x1xf32>
    %41 = arith.subf %33, %40 : vector<4x1xf32>
    %42 = vector.shape_cast %41 : vector<4x1xf32> to vector<1x4x1xf32>
    %cst_15 = arith.constant dense<0.000000e+00> : vector<1xf32>
    %43 = vector.multi_reduction <add>, %42, %cst_15 [1, 2] : vector<1x4x1xf32> to vector<1xf32>
    %44 = vector.shape_cast %43 : vector<1xf32> to vector<1x1x1xf32>
    %45 = vector.extract %44[0, 0, 0] : f32 from vector<1x1x1xf32>
    %46 = arith.addf %22, %45 : f32
    %c0_16 = arith.constant 0 : index
    %c0_17 = arith.constant 0 : index
    %47 = vector.load %arg5[%c0_16, %c0_17] : memref<6x10xf32, #tpu.memory_space<vmem>>, vector<6x10xf32>
    %c0_18 = arith.constant 0 : index
    %c0_19 = arith.constant 0 : index
    %48 = vector.load %arg6[%c0_18, %c0_19] : memref<6x1xi32, #tpu.memory_space<vmem>>, vector<6x1xi32>
    %cst_20 = arith.constant dense<0xFF800000> : vector<6xf32>
    %49 = vector.multi_reduction <maximumf>, %47, %cst_20 [1] : vector<6x10xf32> to vector<6xf32>
    %50 = vector.shape_cast %49 : vector<6xf32> to vector<6x1xf32>
    %51 = vector.broadcast %50 : vector<6x1xf32> to vector<6x10xf32>
    %52 = arith.subf %47, %51 : vector<6x10xf32>
    %53 = math.exp %52 : vector<6x10xf32>
    %cst_21 = arith.constant dense<0.000000e+00> : vector<6xf32>
    %54 = vector.multi_reduction <add>, %53, %cst_21 [1] : vector<6x10xf32> to vector<6xf32>
    %55 = vector.shape_cast %54 : vector<6xf32> to vector<6x1xf32>
    %56 = math.log %55 : vector<6x1xf32>
    %57 = arith.addf %50, %56 : vector<6x1xf32>
    %58 = tpu.iota {dimensions = array<i32: 1>} : vector<6x10xi32>
    %59 = vector.broadcast %48 : vector<6x1xi32> to vector<6x10xi32>
    %60 = arith.cmpi eq, %58, %59 : vector<6x10xi32>
    %cst_22 = arith.constant 0.000000e+00 : f32
    %61 = vector.broadcast %cst_22 : f32 to vector<6x10xf32>
    %62 = arith.select %60, %47, %61 : vector<6x10xi1>, vector<6x10xf32>
    %cst_23 = arith.constant dense<0.000000e+00> : vector<6xf32>
    %63 = vector.multi_reduction <add>, %62, %cst_23 [1] : vector<6x10xf32> to vector<6xf32>
    %64 = vector.shape_cast %63 : vector<6xf32> to vector<6x1xf32>
    %65 = arith.subf %57, %64 : vector<6x1xf32>
    %66 = vector.shape_cast %65 : vector<6x1xf32> to vector<1x6x1xf32>
    %cst_24 = arith.constant dense<0.000000e+00> : vector<1xf32>
    %67 = vector.multi_reduction <add>, %66, %cst_24 [1, 2] : vector<1x6x1xf32> to vector<1xf32>
    %68 = vector.shape_cast %67 : vector<1xf32> to vector<1x1x1xf32>
    %69 = vector.extract %68[0, 0, 0] : f32 from vector<1x1x1xf32>
    %70 = arith.addf %46, %69 : f32
    %c0_25 = arith.constant 0 : index
    %c0_26 = arith.constant 0 : index
    %71 = vector.load %arg7[%c0_25, %c0_26] : memref<2x128xf32, #tpu.memory_space<vmem>>, vector<2x128xf32>
    %c0_27 = arith.constant 0 : index
    %c0_28 = arith.constant 0 : index
    %72 = vector.load %arg8[%c0_27, %c0_28] : memref<2x128xf32, #tpu.memory_space<vmem>>, vector<2x128xf32>
    %73 = arith.subf %71, %72 : vector<2x128xf32>
    %cst_29 = arith.constant 0.166666672 : f32
    %74 = arith.mulf %70, %cst_29 : f32
    %75 = arith.mulf %73, %73 : vector<2x128xf32>
    %76 = vector.shape_cast %75 : vector<2x128xf32> to vector<1x2x128xf32>
    %cst_30 = arith.constant dense<0.000000e+00> : vector<1xf32>
    %77 = vector.multi_reduction <add>, %76, %cst_30 [1, 2] : vector<1x2x128xf32> to vector<1xf32>
    %78 = vector.shape_cast %77 : vector<1xf32> to vector<1x1x1xf32>
    %79 = vector.extract %78[0, 0, 0] : f32 from vector<1x1x1xf32>
    %cst_31 = arith.constant 5.000000e-01 : f32
    %80 = arith.mulf %79, %cst_31 : f32
    %81 = arith.addf %74, %80 : f32
    %c0_32 = arith.constant 0 : index
    %c0_33 = arith.constant 0 : index
    %82 = memref.load %arg9[%c0_32, %c0_33] : memref<1x1xf32, #tpu.memory_space<smem>>
    memref.store %81, %arg9[%c0_32, %c0_33] : memref<1x1xf32, #tpu.memory_space<smem>>
    return
  }
  func.func @transform_0(%arg0: i32) -> (i32, i32) {
    %c0_i32 = arith.constant 0 : i32
    %c0_i32_0 = arith.constant 0 : i32
    %c0_i32_1 = arith.constant 0 : i32
    return %c0_i32, %c0_i32_0 : i32, i32
  }
  func.func @transform_1(%arg0: i32) -> (i32, i32) {
    %c0_i32 = arith.constant 0 : i32
    %c0_i32_0 = arith.constant 0 : i32
    %c0_i32_1 = arith.constant 0 : i32
    return %c0_i32, %c0_i32_0 : i32, i32
  }
  func.func @transform_2(%arg0: i32) -> (i32, i32) {
    %c0_i32 = arith.constant 0 : i32
    %c0_i32_0 = arith.constant 0 : i32
    %c0_i32_1 = arith.constant 0 : i32
    return %c0_i32, %c0_i32_0 : i32, i32
  }
  func.func @transform_3(%arg0: i32) -> (i32, i32) {
    %c0_i32 = arith.constant 0 : i32
    %c0_i32_0 = arith.constant 0 : i32
    %c0_i32_1 = arith.constant 0 : i32
    return %c0_i32, %c0_i32_0 : i32, i32
  }
  func.func @transform_4(%arg0: i32) -> (i32, i32) {
    %c0_i32 = arith.constant 0 : i32
    %c0_i32_0 = arith.constant 0 : i32
    %c0_i32_1 = arith.constant 0 : i32
    return %c0_i32, %c0_i32_0 : i32, i32
  }
  func.func @transform_5(%arg0: i32) -> (i32, i32) {
    %c0_i32 = arith.constant 0 : i32
    %c0_i32_0 = arith.constant 0 : i32
    %c0_i32_1 = arith.constant 0 : i32
    return %c0_i32, %c0_i32_0 : i32, i32
  }
  func.func @transform_6(%arg0: i32) -> (i32, i32) {
    %c0_i32 = arith.constant 0 : i32
    %c0_i32_0 = arith.constant 0 : i32
    %c0_i32_1 = arith.constant 0 : i32
    return %c0_i32, %c0_i32_0 : i32, i32
  }
  func.func @transform_7(%arg0: i32) -> (i32, i32) {
    %c0_i32 = arith.constant 0 : i32
    %c0_i32_0 = arith.constant 0 : i32
    %c0_i32_1 = arith.constant 0 : i32
    return %c0_i32, %c0_i32_0 : i32, i32
  }
  func.func @transform_8(%arg0: i32) -> (i32, i32) {
    %c0_i32 = arith.constant 0 : i32
    %c0_i32_0 = arith.constant 0 : i32
    %c0_i32_1 = arith.constant 0 : i32
    return %c0_i32, %c0_i32_0 : i32, i32
  }
}

</mosaic_0001>

<bundles_post_ra>
// kernel: tpu_custom_call.1
= control target key start
LH: loop header
LB: loop body
LE: loop exit
PB: predicated region body
PF: predicated region fallthrough
CT: control target
= control target key end

     0   :  { %vm32_vm0 = vcmask 74752   ;;  %vm105_vm1 = vcmask 78848   ;;  %v213_v5 = vmov 0   ;;  %s296_s0 = inlined_call_operand.vmem [shape: f32[2,10], index: 0, kind: input, shape index: {}]   ;;  %s297_s1 = inlined_call_operand.vmem [shape: s32[2,1], index: 1, kind: input, shape index: {}]   ;;  %s298_s2 = inlined_call_operand.vmem [shape: f32[4,10], index: 2, kind: input, shape index: {}]   ;;  %s299_s3 = inlined_call_operand.vmem [shape: s32[4,1], index: 3, kind: input, shape index: {}]   ;;  %s300_s4 = inlined_call_operand.vmem [shape: f32[6,10], index: 4, kind: input, shape index: {}]   ;;  %s301_s5 = inlined_call_operand.vmem [shape: s32[6,1], index: 5, kind: input, shape index: {}]   ;;  %s302_s6 = inlined_call_operand.vmem [shape: f32[2,128], index: 6, kind: input, shape index: {}]   ;;  %s303_s7 = inlined_call_operand.vmem [shape: f32[2,128], index: 7, kind: input, shape index: {}]   ;;  %s304_s8 = inlined_call_operand.hbm [shape: f32[1,1], index: 8, kind: output, shape index: {}]  }
   0x1   :  { %v30_v0 = vld [vmem:[%s296_s0] sm:$0x3]  ;;  %184 = vset.pattern.permute.xlu1 %v213_v5  ;;  %185 = vset.pattern.permute.xlu2 %v213_v5 }
   0x2   :  { %v103_v1 = vld [vmem:[%s300_s4] sm:$0x3f]  ;;  %v33_v2 = vsel %vm32_vm0, %v30_v0, -inf }
   0x3   :  { %v106_v3 = vsel %vm105_vm1, %v103_v1, -inf  ;;  %34 = vmax.xlane.f32.xlu0 %v33_v2  ;;  %v68_v4 = vld [vmem:[%s299_s3] sm:$0xf] }
   0x4   :  { %107 = vmax.xlane.f32.xlu1 %v106_v3 }
   0x5   :  { %13 = vsyncpa [#allocation3], 0  ;;  %v67_v6 = vld [vmem:[%s298_s2] sm:$0xf]  ;;  %vm69_vm2 = vcmask 76800   ;;  %83 = vperm.xlu2 %185, %v68_v4   ;;  %186 = vset.pattern.permute.xlu0 %v213_v5  ;;  %v45_v10 = vlaneseq  ;;  %vm56_vm6 = vcmask 1024  }
   0x6   :  { %v70_v7 = vsel %vm69_vm2, %v67_v6, -inf  ;;  %v104_v8 = vld [vmem:[%s301_s5] sm:$0x3f]  ;;  %vm91_vm7 = vcmask 3072   ;;  %vm127_vm8 = vcmask 5120   ;;  %vm144_vm9 = vcmask 1041408  }
   0x7   :  { %v31_v9 = vld [vmem:[%s297_s1] sm:$0x3]  ;;  %v46_v11 = vand.u32 127, %v45_v10  ;;  %s164_s20 = sshll.u32 %s304_s8, 4  ;;  %s214_s25 = smov [#allocation2]   ;;  %s165_s20 = int_to_ptr.hbm [resolvable:$true] %s164_s20 }
   0x8   :  { %v139_v51 = vld [vmem:[%s302_s6] sm:$0x3] }
   0x9   :  { %v140_v52 = vld [vmem:[%s303_s7] sm:$0x3] }
   0xa   :  { %v141_v57 = vsub.f32 %v139_v51, %v140_v52 }
   0xb   :  { %71 = vmax.xlane.f32.xlu0 %v70_v7 }
   0xc   :  { %v143_v60 = vmul.f32 %v141_v57, %v141_v57 }
   0xd   :  { %119 = vperm.xlu2 %185, %v104_v8  }
   0xe   :  { %v145_v61 = vsel %vm144_vm9, %v143_v60, 0.0 }
  0x1d   :  { %48 = vperm.xlu1 %184, %v31_v9  }
  0x5f   :  { %v84_v12 = vpop.permute.xlu2 %83 }
  0x60   :  { %vm85_vm3 = vcmp.eq.s32.totalorder %v46_v11, %v84_v12 }
  0x61   :  { %v86_v13 = vsel %vm85_vm3, %v67_v6, 0.0 }
  0x62   :  { %v87_v14 = vsel %vm69_vm2, %v86_v13, 0.0 }
  0x63   :  { %88 = vadd.xlane.f32.xlu1 %v87_v14 }
  0x67   :  { %v120_v33 = vpop.permute.xlu2 %119 }
  0x68   :  { %vm121_vm5 = vcmp.eq.s32.totalorder %v46_v11, %v120_v33 }
  0x69   :  { %v122_v34 = vsel %vm121_vm5, %v103_v1, 0.0 }
  0x6a   :  { %v123_v35 = vsel %vm105_vm1, %v122_v34, 0.0 }
  0x76   :  { %v35_v15 = vpop.xlane.xlu0 %34 }
  0x77   :  { %v108_v16 = vpop.xlane.xlu1 %107  ;;  %v36_v17 = vsub.f32 %v30_v0, %v35_v15 }
  0x78   :  { %v109_v19 = vsub.f32 %v103_v1, %v108_v16 }
  0x79   :  { %v37_v18 = vmul.f32 1.442695, %v36_v17 }
  0x7a   :  { %v110_v20 = vmul.f32 1.442695, %v109_v19 }
  0x7b   :  { %187 = vpow2.f32 %v37_v18 }
  0x7c   :  { %189 = vpow2.f32 %v110_v20 }
  0x7e   :  { %v72_v21 = vpop.xlane.xlu0 %71 }
  0x7f   :  { %v73_v22 = vsub.f32 %v67_v6, %v72_v21 }
  0x81   :  { %v188_v23 = vpop.eup %187  ;;  %v74_v24 = vmul.f32 1.442695, %v73_v22 }
  0x82   :  { %v39_v25 = vsel %vm32_vm0, %v188_v23, 0.0  ;;  %v190_v26 = vpop.eup %189 }
  0x83   :  { %191 = vpow2.f32 %v74_v24  ;;  %40 = vadd.xlane.f32.xlu0 %v39_v25  ;;  %v112_v28 = vsel %vm105_vm1, %v190_v26, 0.0 }
  0x89   :  { %v192_v27 = vpop.eup %191 }
  0x8a   :  { %v76_v29 = vsel %vm69_vm2, %v192_v27, 0.0 }
  0x8b   :  { %113 = vadd.xlane.f32.xlu0 %v112_v28  ;;  %77 = vadd.xlane.f32.xlu2 %v76_v29 }
  0x8f   :  { %v49_v30 = vpop.permute.xlu1 %48 }
  0x90   :  { %vm50_vm4 = vcmp.eq.s32.totalorder %v46_v11, %v49_v30 }
  0x91   :  { %v51_v31 = vsel %vm50_vm4, %v30_v0, 0.0 }
  0x92   :  { %v52_v32 = vsel %vm32_vm0, %v51_v31, 0.0 }
  0x93   :  { %53 = vadd.xlane.f32.xlu0 %v52_v32 }
  0x9b   :  { %124 = vadd.xlane.f32.xlu0 %v123_v35 }
  0xd6   :  { %v89_v50 = vpop.xlane.xlu1 %88 }
  0xf6   :  { %v41_v36 = vpop.xlane.xlu0 %40 }
  0xf7   :  { %193 = vlog2.f32 %v41_v36 }
  0xfd   :  { %v194_v37 = vpop.eup %193 }
  0xfe   :  { %v78_v38 = vpop.xlane.xlu2 %77  ;;  %v114_v39 = vpop.xlane.xlu0 %113  ;;  %v43_v40 = vmul.f32 0.6931472, %v194_v37 }
  0xff   :  { %195 = vlog2.f32 %v78_v38 }
 0x100   :  { %197 = vlog2.f32 %v114_v39  ;;  %v44_v42 = vadd.f32 %v43_v40, %v35_v15 }
 0x105   :  { %v196_v41 = vpop.eup %195 }
 0x106   :  { %v198_v43 = vpop.eup %197  ;;  %v80_v44 = vmul.f32 0.6931472, %v196_v41  ;;  %v54_v45 = vpop.xlane.xlu0 %53 }
 0x107   :  { %v55_v46 = vsub.f32 %v44_v42, %v54_v45  ;;  %v116_v47 = vmul.f32 0.6931472, %v198_v43 }
 0x108   :  { %v81_v48 = vadd.f32 %v80_v44, %v72_v21 }
 0x109   :  { %v57_v49 = vsel %vm56_vm6, %v55_v46, 0.0  ;;  %v117_v54 = vadd.f32 %v116_v47, %v108_v16 }
 0x10a   :  { %58 = vadd.xlane.f32.xlu0 %v57_v49  ;;  %v90_v53 = vsub.f32 %v81_v48, %v89_v50 }
 0x10c   :  { %v92_v58 = vsel %vm91_vm7, %v90_v53, 0.0 }
 0x10e   :  { %v125_v55 = vpop.xlane.xlu0 %124 }
 0x10f   :  { %v126_v56 = vsub.f32 %v117_v54, %v125_v55 }
 0x111   :  { %v128_v59 = vsel %vm127_vm8, %v126_v56, 0.0 }
 0x112   :  { %93 = vadd.xlane.f32.xlu0 %v92_v58  ;;  %129 = vadd.xlane.f32.xlu2 %v128_v59 }
 0x11a   :  { %146 = vadd.xlane.f32.xlu0 %v145_v61 }
 0x17d   :  { %v59_v62 = vpop.xlane.xlu0 %58 }
 0x17e   :  { %v60_v63 = vrot.slane %v59_v62, 4 }
 0x180   :  { %v61_v0 = vadd.f32 %v60_v63, %v59_v62 }
 0x182   :  { %v62_v1 = vrot.slane %v61_v0, 2 }
 0x184   :  { %v63_v2 = vadd.f32 %v62_v1, %v61_v0 }
 0x185   :  { %v130_v3 = vpop.xlane.xlu2 %129  ;;  %v94_v4 = vpop.xlane.xlu0 %93 }
 0x186   :  { %v131_v5 = vrot.slane %v130_v3, 4  ;;  %v95_v6 = vrot.slane %v94_v4, 4  ;;  %v64_v7 = vrot.slane %v63_v2, 1 }
 0x188   :  { %v132_v8 = vadd.f32 %v131_v5, %v130_v3  ;;  %v96_v9 = vadd.f32 %v95_v6, %v94_v4  ;;  %v65_v10 = vadd.f32 %v64_v7, %v63_v2 }
 0x18a   :  { %v133_v11 = vrot.slane %v132_v8, 2  ;;  %v97_v12 = vrot.slane %v96_v9, 2  ;;  %174 = vpush %v65_v10 }
 0x18c   :  { %v134_v13 = vadd.f32 %v133_v11, %v132_v8  ;;  %v98_v14 = vadd.f32 %v97_v12, %v96_v9 }
 0x18d   :  { %v147_v15 = vpop.xlane.xlu0 %146 }
 0x18e   :  { %v148_v16 = vrot.slane %v147_v15, 4  ;;  %v99_v17 = vrot.slane %v98_v14, 1  ;;  %v135_v18 = vrot.slane %v134_v13, 1 }
 0x190   :  { %v149_v19 = vadd.f32 %v148_v16, %v147_v15  ;;  %v100_v20 = vadd.f32 %v99_v17, %v98_v14  ;;  %v136_v21 = vadd.f32 %v135_v18, %v134_v13 }
 0x192   :  { %v150_v22 = vrot.slane %v149_v19, 2  ;;  %176 = vpush %v100_v20 }
 0x193   :  { %178 = vpush %v136_v21 }
 0x194   :  { %v151_v23 = vadd.f32 %v150_v22, %v149_v19 }
 0x196   :  { %v152_v24 = vrot.slane %v151_v23, 1 }
 0x198   :  { %v153_v25 = vadd.f32 %v152_v24, %v151_v23 }
 0x19a   :  { %180 = vpush %v153_v25 }
 0x1bb   :  { %s175_s6 = spop %174 }
 0x1c3   :  { %s177_s7 = spop %176 }
 0x1c4   :  { %s102_s15 = sadd.f32 %s177_s7, %s175_s6  ;;  %s179_s16 = spop %178 }
 0x1c6   :  { %s138_s17 = sadd.f32 %s179_s16, %s102_s15 }
 0x1c8   :  { %s142_s21 = smul.f32 0.16666667, %s138_s17 }
 0x1cb   :  { %s181_s22 = spop %180 }
 0x1cc   :  { %s155_s23 = smul.f32 0.5, %s181_s22 }
 0x1ce   :  { %s156_s24 = sadd.f32 %s155_s23, %s142_s21 }
 0x1d0   :  { %158 = sst [smem:[#allocation2]] %s156_s24 }
 0x1d1   :  { %167 = dma.smem_to_hbm %s214_s25, 16, %s165_s20, [#allocation3]  }
 0x1d2   :  { %211 = dma.done.wait [#allocation3], 16  }
 0x1d3   :  { %212 = vsyncadd [#allocation3], 4294967280 }
 0x1d4   :  { %172 = sfence }
 0x1d5   :  { %173 = vsyncpa [#allocation3], 1 }

</bundles_post_ra>
